<compile_context>
chip_gen: v5e
topology: v5e:2x2
jax: 0.10.0
libtpu: 0.0.40
codegen_flags: <defaults>
</compile_context>

<pallas_src>
import functools

import jax
import jax.numpy as jnp
from jax.experimental import pallas as pl
from jax.experimental.pallas import tpu as pltpu

IN_FEATURES = 240           # 16 * 15, fixed by fc11/fc21
OUT_FEATURES = 64
OUT_LANES = 128             # lane-dense output tile: 64 real + 64 zero lanes

# Budget for the double-buffered x blocks (the only large VMEM consumer).
_X_VMEM_BUDGET_BYTES = 24 << 20
_VMEM_LIMIT_CAP_BYTES = 40 << 20   # safely below v7x's 64 MiB physical VMEM


def _embedding_kernel(x_ref, w_ref, b_ref, out_ref):
    """x_ref: (TB, S, D); w_ref: (D, 128); b_ref: (1, 128); out_ref: (TB, 128)."""
    # Support-sum: accumulating cross-sublane (XLU) reduce; no widened f32 copy
    # of the full block is materialized even when x is bf16.
    xs = jnp.sum(x_ref[...], axis=1, dtype=jnp.float32)             # (TB, D)
    # Single folded-linear matmul on the MXU, f32 accumulation.
    acc = jnp.dot(xs.astype(w_ref.dtype), w_ref[...],
                  preferred_element_type=jnp.float32)               # (TB, 128)
    out_ref[...] = acc + b_ref[...]                                 # f32 store


def _choose_batch_tile(B, S, D, itemsize, requested):
    """Pick a large batch tile: multiple of the sublane packing, within the
    VMEM budget, <= ~ceil(B/2) (>= 2 grid steps for v7x megacore), and never
    larger than one sublane-padded batch."""
    mult = 16 if itemsize == 2 else 8
    tb = int(requested)
    tb = min(tb, max(mult, _X_VMEM_BUDGET_BYTES // (2 * S * D * itemsize)))
    tb = min(tb, pl.cdiv(B, mult) * mult)          # never exceed padded batch
    if B >= 2 * mult:
        tb = min(tb, pl.cdiv(B, 2))                # keep >= 2 grid steps
    return max(mult, (tb // mult) * mult)


@functools.partial(jax.jit, static_argnames=("compute_dtype", "batch_tile"))
def embedding_net_forward(x, params, *, compute_dtype=jnp.float32,
                          batch_tile=512):
    """x: (batch, support, 240) -> (batch, 64) float32."""
    B, S, D = x.shape
    w11, b11, w12, b12, w21, b21, w22, b22 = params
    del w21, b21, w22, b22   # dead branch: singleton-axis softmax == 1.0 exactly

    # Fold fc11/fc12:  h = (x @ w11 + b11) @ w12 + b12 = x @ W_fold + b_fold.
    w_fold = jnp.dot(w11, w12)                                       # (D, 64)
    b_fold = jnp.dot(b11, w12) + b12                                 # (1, 64)

    # Support-sum commutes with the affine map: out = (sum_s x) @ W + S*b_fold.
    # Zero-pad the out-feature axis to 128 lanes -> unmasked lane-dense store.
    w_pad = jnp.zeros((D, OUT_LANES), compute_dtype)
    w_pad = w_pad.at[:, :OUT_FEATURES].set(w_fold.astype(compute_dtype))
    b_pad = jnp.zeros((1, OUT_LANES), jnp.float32)
    b_pad = b_pad.at[:, :OUT_FEATURES].set(jnp.float32(S) * b_fold)

    # Stream x in its incoming dtype (no extra wrapper-side astype HBM pass).
    itemsize = jnp.dtype(x.dtype).itemsize
    tb = _choose_batch_tile(B, S, D, itemsize, batch_tile)
    grid = (pl.cdiv(B, tb),)
    # No batch padding: partial last tiles handled by the grid machinery.

    # Raise the scoped-VMEM limit only when the working set needs it.
    vmem_needed = (2 * tb * S * D * itemsize                 # x, double-buffered
                   + 2 * tb * OUT_LANES * 4                  # output blocks
                   + 2 * D * OUT_LANES * jnp.dtype(compute_dtype).itemsize
                   + 2 * OUT_LANES * 4                       # bias
                   + (2 << 20))                              # headroom
    vmem_limit = (None if vmem_needed <= (14 << 20)
                  else min(vmem_needed, _VMEM_LIMIT_CAP_BYTES))

    out = pl.pallas_call(
        _embedding_kernel,
        out_shape=jax.ShapeDtypeStruct((B, OUT_LANES), jnp.float32),
        grid=grid,
        in_specs=[
            pl.BlockSpec((tb, S, D), lambda i: (i, 0, 0)),
            pl.BlockSpec((D, OUT_LANES), lambda i: (0, 0)),
            pl.BlockSpec((1, OUT_LANES), lambda i: (0, 0)),
        ],
        out_specs=pl.BlockSpec((tb, OUT_LANES), lambda i: (i, 0)),
        compiler_params=pltpu.CompilerParams(
            dimension_semantics=("parallel",),
            vmem_limit_bytes=vmem_limit),
        cost_estimate=pl.CostEstimate(
            flops=2 * B * D * OUT_FEATURES + B * S * D,
            transcendentals=0,
            bytes_accessed=(B * S * D * itemsize
                            + D * OUT_FEATURES * 4
                            + B * OUT_FEATURES * 4)),
    )(x, w_pad, b_pad)
    return out[:, :OUT_FEATURES]


def reference(x, params):
    """Pure-JAX reference of the full intended forward (incl. the provably
    dead attention/mean branch), for correctness checking."""
    w11, b11, w12, b12, w21, b21, w22, b22 = params
    B, S, D = x.shape
    x = x.astype(jnp.float32)
    mean = x.mean(axis=1)                                           # (B, 240)
    h = x.reshape(B * S, D) @ w11 + b11
    h = (h @ w12 + b12).reshape(B, S, OUT_FEATURES)                 # (B, S, 64)
    m = mean @ w21 + b21
    m = m @ w22 + b22                                               # (B, 64)
    score = jnp.einsum('bd,bsd->bs', m, h)[..., None, None]         # (B, S, 1, 1)
    att = jax.nn.softmax(score, axis=-1)[:, :, 0, :]                # (B, S, 1)
    att = att + jnp.zeros((B, S, OUT_FEATURES), jnp.float32)        # (B, S, 64)
    return (h * att).sum(axis=1)                                    # (B, 64)


def make_linear_params(kw, kb, fan_in, fan_out):
    # PyTorch nn.Linear default init: U(-1/sqrt(fan_in), 1/sqrt(fan_in))
    bound = 1.0 / (fan_in ** 0.5)
    w = jax.random.uniform(kw, (fan_out, fan_in), jnp.float32, -bound, bound)
    b = jax.random.uniform(kb, (fan_out,), jnp.float32, -bound, bound)
    return w.T, b.reshape(1, fan_out)   # stored as (in, out), (1, out)


if __name__ == "__main__":
    key = jax.random.PRNGKey(0)
    keys = jax.random.split(key, 10)

    D = IN_FEATURES   # 240, fixed by fc11/fc21

    w11, b11 = make_linear_params(keys[0], keys[1], 240, 128)
    w12, b12 = make_linear_params(keys[2], keys[3], 128, 64)
    w21, b21 = make_linear_params(keys[4], keys[5], 240, 128)
    w22, b22 = make_linear_params(keys[6], keys[7], 128, 64)
    params = (w11, b11, w12, b12, w21, b21, w22, b22)

    # Small primary test (module docstring shapes, scaled down).
    B1, S1 = 2, 8
    x1 = jax.random.normal(keys[8], (B1, S1, D), jnp.float32)
    out1 = jax.block_until_ready(embedding_net_forward(x1, params))
    ref1 = reference(x1, params)
    assert out1.shape == (B1, OUT_FEATURES), out1.shape
    assert jnp.allclose(out1, ref1, atol=2e-3, rtol=2e-3), (
        float(jnp.max(jnp.abs(out1 - ref1))))

    # Batch that is neither a multiple of 8 nor of the tile: exercises the
    # no-pad partial last grid tile and a multi-step "parallel" grid.
    B2, S2 = 37, 8
    x2 = jax.random.normal(keys[9], (B2, S2, D), jnp.float32)
    out2 = jax.block_until_ready(embedding_net_forward(x2, params))
    ref2 = reference(x2, params)
    assert out2.shape == (B2, OUT_FEATURES), out2.shape
    assert jnp.allclose(out2, ref2, atol=2e-3, rtol=2e-3), (
        float(jnp.max(jnp.abs(out2 - ref2))))

    # bf16 feed path (used only when the upstream producer already emits bf16);
    # MXU accumulation stays f32, so only input/weight rounding differs.
    out3 = jax.block_until_ready(
        embedding_net_forward(x1.astype(jnp.bfloat16), params,
                              compute_dtype=jnp.bfloat16))
    assert out3.shape == (B1, OUT_FEATURES), out3.shape
    assert jnp.allclose(out3, ref1, atol=0.3, rtol=0.1), (
        float(jnp.max(jnp.abs(out3 - ref1))))

    print("KERNEL_OK")
</pallas_src>

<mosaic_0001>
module attributes {stable_mosaic.version = 11 : i64} {
  func.func @_embedding_kernel(%arg0: i32, %arg1: memref<8x8x240xf32, #tpu.memory_space<vmem>>, %arg2: memref<240x128xf32, #tpu.memory_space<vmem>>, %arg3: memref<1x128xf32, #tpu.memory_space<vmem>>, %arg4: memref<8x128xf32, #tpu.memory_space<vmem>>) attributes {dimension_semantics = [#tpu.dimension_semantics<parallel>], iteration_bounds = array<i64: 1>, scalar_prefetch = 0 : i64, scratch_operands = 0 : i64, tpu.core_type = #tpu.core_type<tc>, window_params = [{transform_indices = @transform_0, window_bounds = array<i64: 8, 8, 240>}, {pipeline_mode = #tpu.pipeline_mode<synchronous>, transform_indices = @transform_1, window_bounds = array<i64: 240, 128>}, {pipeline_mode = #tpu.pipeline_mode<synchronous>, transform_indices = @transform_2, window_bounds = array<i64: 1, 128>}, {transform_indices = @transform_3, window_bounds = array<i64: 8, 128>}]} {
    %c0 = arith.constant 0 : index
    %c0_0 = arith.constant 0 : index
    %c0_1 = arith.constant 0 : index
    %0 = vector.load %arg1[%c0, %c0_0, %c0_1] : memref<8x8x240xf32, #tpu.memory_space<vmem>>, vector<8x8x240xf32>
    %cst = arith.constant dense<0.000000e+00> : vector<8x240xf32>
    %1 = vector.multi_reduction <add>, %0, %cst [1] : vector<8x8x240xf32> to vector<8x240xf32>
    %c0_2 = arith.constant 0 : index
    %c0_3 = arith.constant 0 : index
    %2 = vector.load %arg2[%c0_2, %c0_3] : memref<240x128xf32, #tpu.memory_space<vmem>>, vector<240x128xf32>
    %cst_4 = arith.constant dense<0.000000e+00> : vector<8x128xf32>
    %3 = tpu.matmul %1, %2, %cst_4 {dimension_numbers = #tpu.dot_dimension_numbers<[1], [0], [0], [1], [0, 0, 1, 1], [], []>} : vector<8x240xf32>, vector<240x128xf32>, vector<8x128xf32> -> vector<8x128xf32>
    %c0_5 = arith.constant 0 : index
    %c0_6 = arith.constant 0 : index
    %4 = vector.load %arg3[%c0_5, %c0_6] : memref<1x128xf32, #tpu.memory_space<vmem>>, vector<1x128xf32>
    %5 = vector.broadcast %4 : vector<1x128xf32> to vector<8x128xf32>
    %6 = arith.addf %3, %5 : vector<8x128xf32>
    %c0_7 = arith.constant 0 : index
    %c0_8 = arith.constant 0 : index
    %7 = vector.load %arg4[%c0_7, %c0_8] : memref<8x128xf32, #tpu.memory_space<vmem>>, vector<8x128xf32>
    tpu.vector_store %arg4[%c0_7, %c0_8], %6 {strides = array<i32>} : memref<8x128xf32, #tpu.memory_space<vmem>>, vector<8x128xf32>,
    return
  }
  func.func @transform_0(%arg0: i32) -> (i32, i32, i32) {
    %c0_i32 = arith.constant 0 : i32
    %c0_i32_0 = arith.constant 0 : i32
    %c0_i32_1 = arith.constant 0 : i32
    return %arg0, %c0_i32, %c0_i32_0 : i32, i32, i32
  }
  func.func @transform_1(%arg0: i32) -> (i32, i32) {
    %c0_i32 = arith.constant 0 : i32
    %c0_i32_0 = arith.constant 0 : i32
    %c0_i32_1 = arith.constant 0 : i32
    return %c0_i32, %c0_i32_0 : i32, i32
  }
  func.func @transform_2(%arg0: i32) -> (i32, i32) {
    %c0_i32 = arith.constant 0 : i32
    %c0_i32_0 = arith.constant 0 : i32
    %c0_i32_1 = arith.constant 0 : i32
    return %c0_i32, %c0_i32_0 : i32, i32
  }
  func.func @transform_3(%arg0: i32) -> (i32, i32) {
    %c0_i32 = arith.constant 0 : i32
    %c0_i32_0 = arith.constant 0 : i32
    return %arg0, %c0_i32 : i32, i32
  }
}

</mosaic_0001>

<bundles_post_ra>
// kernel: embedding_net_forward.1
= control target key start
LH: loop header
LB: loop body
LE: loop exit
PB: predicated region body
PF: predicated region fallthrough
CT: control target
= control target key end

     0   :  { %8 = vsyncpa [#allocation3], 0  ;;  %vm186_vm0 = vcmask 1041409   ;;  %vm37_vm1 = vcmask 916480   ;;  %vm188_vm2 = vcmask 1042434   ;;  %vm190_vm3 = vcmask 1043459   ;;  %s490_s0 = inlined_call_operand.vmem [shape: f32[2,8,240], index: 0, kind: input, shape index: {}]   ;;  %s491_s1 = inlined_call_operand.vmem [shape: f32[240,128], index: 1, kind: input, shape index: {}]   ;;  %s492_s2 = inlined_call_operand.vmem [shape: f32[1,128], index: 2, kind: input, shape index: {}]   ;;  %s493_s3 = inlined_call_operand.hbm [shape: f32[2,128], index: 3, kind: output, shape index: {}]  }
   0x1   :  { %v151_v0 = vld [vmem:[%s491_s1 + $0x78] sm:$0xff]  ;;  %v150_v1 = vld [vmem:[%s491_s1 + $0x70] sm:$0xff]  ;;  %v165_v2 = vld [vmem:[%s491_s1 + $0xe8] sm:$0xff]  ;;  %vm192_vm4 = vcmask 1044484   ;;  %vm194_vm5 = vcmask 1045509   ;;  %vm196_vm6 = vcmask 1046534  }
   0x2   :  { %210 = vmatpush.msra.mxu0 %v151_v0  ;;  %v149_v3 = vld [vmem:[%s491_s1 + $0x68] sm:$0xff]  ;;  %232 = vmatpush.msra.mxu1 %v165_v2  ;;  %v164_v4 = vld [vmem:[%s491_s1 + $0xe0] sm:$0xff]  ;;  %v163_v5 = vld [vmem:[%s491_s1 + $0xd8] sm:$0xff]  ;;  %vm198_vm7 = vcmask 1047559  }
   0x3   :  { %v148_v6 = vld [vmem:[%s491_s1 + $0x60] sm:$0xff]  ;;  %v162_v7 = vld [vmem:[%s491_s1 + $0xd0] sm:$0xff]  ;;  %v147_v8 = vld [vmem:[%s491_s1 + $0x58] sm:$0xff] }
   0x4   :  { %211 = vmatpush.msra.mxu0 %v150_v1  ;;  %233 = vmatpush.msra.mxu1 %v164_v4  ;;  %v161_v9 = vld [vmem:[%s491_s1 + $0xc8] sm:$0xff]  ;;  %v146_v10 = vld [vmem:[%s491_s1 + $0x50] sm:$0xff]  ;;  %v160_v12 = vld [vmem:[%s491_s1 + $0xc0] sm:$0xff] }
   0x5   :  { %v145_v11 = vld [vmem:[%s491_s1 + $0x48] sm:$0xff]  ;;  %v159_v13 = vld [vmem:[%s491_s1 + $0xb8] sm:$0xff]  ;;  %v15_v14 = vld [vmem:[%s490_s0] sm:$0xff] }
   0x6   :  { %212 = vmatpush.msra.mxu0 %v149_v3  ;;  %234 = vmatpush.msra.mxu1 %v163_v5  ;;  %v17_v15 = vld [vmem:[%s490_s0 + $0x10] sm:$0xff]  ;;  %v19_v16 = vld [vmem:[%s490_s0 + $0x20] sm:$0xff]  ;;  %v31_v20 = vrot.slane %v15_v14, 4  ;;  %v143_v34 = vld [vmem:[%s491_s1 + $0x38] sm:$0xff] }
   0x7   :  { %v21_v17 = vld [vmem:[%s490_s0 + $0x30] sm:$0xff]  ;;  %v23_v18 = vld [vmem:[%s490_s0 + $0x40] sm:$0xff]  ;;  %v45_v21 = vrot.slane %v17_v15, 4  ;;  %v58_v22 = vrot.slane %v19_v16, 4  ;;  %v157_v39 = vld [vmem:[%s491_s1 + $0xa8] sm:$0xff] }
   0x8   :  { %213 = vmatpush.msra.mxu0 %v148_v6  ;;  %235 = vmatpush.msra.mxu1 %v162_v7  ;;  %v25_v19 = vld [vmem:[%s490_s0 + $0x50] sm:$0xff]  ;;  %v144_v23 = vld [vmem:[%s491_s1 + $0x40] sm:$0xff]  ;;  %v71_v26 = vrot.slane %v21_v17, 4  ;;  %v84_v27 = vrot.slane %v23_v18, 4  ;;  %v32_v30 = vadd.f32 %v31_v20, %v15_v14  ;;  %v141_v54 = vld [vmem:[%s491_s1 + $0x28] sm:$0xff] }
   0x9   :  { %v27_v24 = vld [vmem:[%s490_s0 + $0x60] sm:$0xff]  ;;  %v29_v25 = vld [vmem:[%s490_s0 + $0x70] sm:$0xff]  ;;  %v97_v28 = vrot.slane %v25_v19, 4  ;;  %v46_v31 = vadd.f32 %v45_v21, %v17_v15  ;;  %v59_v32 = vadd.f32 %v58_v22, %v19_v16  ;;  %v155_v59 = vld [vmem:[%s491_s1 + $0x98] sm:$0xff] }
   0xa   :  { %214 = vmatpush.msra.mxu0 %v147_v8  ;;  %236 = vmatpush.msra.mxu1 %v161_v9  ;;  %v158_v29 = vld [vmem:[%s491_s1 + $0xb0] sm:$0xff]  ;;  %v110_v33 = vrot.slane %v27_v24, 4  ;;  %v72_v35 = vadd.f32 %v71_v26, %v21_v17  ;;  %v85_v36 = vadd.f32 %v84_v27, %v23_v18  ;;  %v123_v38 = vrot.slane %v29_v25, 4  ;;  %v156_v49 = vld [vmem:[%s491_s1 + $0xa0] sm:$0xff]  ;;  %v16_v5 = vld [vmem:[%s490_s0 + $0x8] sm:$0xff] }
   0xb   :  { %v98_v37 = vadd.f32 %v97_v28, %v25_v19  ;;  %v33_v40 = vrot.slane %v32_v30, 2  ;;  %v47_v41 = vrot.slane %v46_v31, 2  ;;  %v60_v42 = vrot.slane %v59_v32, 2  ;;  %v142_v44 = vld [vmem:[%s491_s1 + $0x30] sm:$0xff]  ;;  %v140_v0 = vld [vmem:[%s491_s1 + $0x20] sm:$0xff]  ;;  %v18_v6 = vld [vmem:[%s490_s0 + $0x18] sm:$0xff] }
   0xc   :  { %215 = vmatpush.msra.mxu0 %v146_v10  ;;  %237 = vmatpush.msra.mxu1 %v160_v12  ;;  %v111_v43 = vadd.f32 %v110_v33, %v27_v24  ;;  %v73_v45 = vrot.slane %v72_v35, 2  ;;  %v86_v46 = vrot.slane %v85_v36, 2  ;;  %v124_v48 = vadd.f32 %v123_v38, %v29_v25  ;;  %v139_v7 = vld [vmem:[%s491_s1 + $0x18] sm:$0xff]  ;;  %v154_v8 = vld [vmem:[%s491_s1 + $0x90] sm:$0xff]  ;;  %v20_v17 = vld [vmem:[%s490_s0 + $0x28] sm:$0xff] }
   0xd   :  { %v99_v47 = vrot.slane %v98_v37, 2  ;;  %v34_v50 = vadd.f32 %v33_v40, %v32_v30  ;;  %v48_v51 = vadd.f32 %v47_v41, %v46_v31  ;;  %v61_v52 = vadd.f32 %v60_v42, %v59_v32  ;;  %v22_v18 = vld [vmem:[%s490_s0 + $0x38] sm:$0xff]  ;;  %v24_v19 = vld [vmem:[%s490_s0 + $0x48] sm:$0xff]  ;;  %v138_v25 = vld [vmem:[%s491_s1 + $0x10] sm:$0xff] }
   0xe   :  { %216 = vmatpush.msra.mxu0 %v145_v11  ;;  %238 = vmatpush.msra.mxu1 %v159_v13  ;;  %v112_v53 = vrot.slane %v111_v43, 2  ;;  %v74_v55 = vadd.f32 %v73_v45, %v72_v35  ;;  %v87_v56 = vadd.f32 %v86_v46, %v85_v36  ;;  %v125_v58 = vrot.slane %v124_v48, 2  ;;  %v153_v20 = vld [vmem:[%s491_s1 + $0x88] sm:$0xff]  ;;  %v26_v28 = vld [vmem:[%s490_s0 + $0x58] sm:$0xff]  ;;  %v152_v32 = vld [vmem:[%s491_s1 + $0x80] sm:$0xff] }
   0xf   :  { %v100_v57 = vadd.f32 %v99_v47, %v98_v37  ;;  %v35_v60 = vrot.slane %v34_v50, 1  ;;  %v49_v61 = vrot.slane %v48_v51, 1  ;;  %v62_v62 = vrot.slane %v61_v52, 1  ;;  %v137_v36 = vld [vmem:[%s491_s1 + $0x8] sm:$0xff]  ;;  %v136_v46 = vld [vmem:[%s491_s1] sm:$0xff] }
  0x10   :  { %217 = vmatpush.msra.mxu0 %v144_v23  ;;  %239 = vmatpush.msra.mxu1 %v158_v29  ;;  %v113_v63 = vadd.f32 %v112_v53, %v111_v43  ;;  %v75_v1 = vrot.slane %v74_v55, 1  ;;  %v88_v2 = vrot.slane %v87_v56, 1  ;;  %v126_v4 = vadd.f32 %v125_v58, %v124_v48  ;;  %v28_v42 = vld [vmem:[%s490_s0 + $0x68] sm:$0xff] }
  0x11   :  { %v101_v3 = vrot.slane %v100_v57, 1  ;;  %v36_v9 = vadd.f32 %v35_v60, %v34_v50  ;;  %v50_v10 = vadd.f32 %v49_v61, %v48_v51  ;;  %v63_v11 = vadd.f32 %v62_v62, %v61_v52  ;;  %v30_v52 = vld [vmem:[%s490_s0 + $0x78] sm:$0xff] }
  0x12   :  { %218 = vmatpush.msra.mxu0 %v143_v34  ;;  %240 = vmatpush.msra.mxu1 %v157_v39  ;;  %v114_v12 = vrot.slane %v113_v63, 1  ;;  %v76_v13 = vadd.f32 %v75_v1, %v74_v55  ;;  %v89_v14 = vadd.f32 %v88_v2, %v87_v56  ;;  %v127_v16 = vrot.slane %v126_v4, 1 }
  0x13   :  { %v102_v15 = vadd.f32 %v101_v3, %v100_v57  ;;  %v187_v22 = vsel %vm186_vm0, %v50_v10, %v36_v9  ;;  %v38_v23 = vsel %vm37_vm1, %v16_v5, 0.0  ;;  %v51_v24 = vsel %vm37_vm1, %v18_v6, 0.0 }
  0x14   :  { %219 = vmatpush.msra.mxu0 %v142_v44  ;;  %241 = vmatpush.msra.mxu1 %v156_v49  ;;  %v115_v21 = vadd.f32 %v114_v12, %v113_v63  ;;  %v128_v26 = vadd.f32 %v127_v16, %v126_v4  ;;  %v189_v27 = vsel %vm188_vm2, %v63_v11, %v187_v22  ;;  %v39_v29 = vrot.slane %v38_v23, 4 }
  0x15   :  { %v52_v30 = vrot.slane %v51_v24, 4  ;;  %v191_v31 = vsel %vm190_vm3, %v76_v13, %v189_v27  ;;  %v64_v33 = vsel %vm37_vm1, %v20_v17, 0.0  ;;  %v77_v34 = vsel %vm37_vm1, %v22_v18, 0.0 }
  0x16   :  { %220 = vmatpush.msra.mxu0 %v141_v54  ;;  %242 = vmatpush.msra.mxu1 %v155_v59  ;;  %v90_v35 = vsel %vm37_vm1, %v24_v19, 0.0  ;;  %v193_v37 = vsel %vm192_vm4, %v89_v14, %v191_v31  ;;  %v40_v38 = vadd.f32 %v39_v29, %v38_v23  ;;  %v65_v40 = vrot.slane %v64_v33, 4 }
  0x17   :  { %v53_v39 = vadd.f32 %v52_v30, %v51_v24  ;;  %v195_v41 = vsel %vm194_vm5, %v102_v15, %v193_v37  ;;  %v78_v43 = vrot.slane %v77_v34, 4  ;;  %v91_v44 = vrot.slane %v90_v35, 4 }
  0x18   :  { %221 = vmatpush.msra.mxu0 %v140_v0  ;;  %243 = vmatpush.msra.mxu1 %v154_v8  ;;  %v103_v45 = vsel %vm37_vm1, %v26_v28, 0.0  ;;  %v197_v47 = vsel %vm196_vm6, %v115_v21, %v195_v41  ;;  %v41_v48 = vrot.slane %v40_v38, 2  ;;  %v66_v50 = vadd.f32 %v65_v40, %v64_v33 }
  0x19   :  { %v54_v49 = vrot.slane %v53_v39, 2  ;;  %v199_v51 = vsel %vm198_vm7, %v128_v26, %v197_v47  ;;  %v79_v53 = vadd.f32 %v78_v43, %v77_v34  ;;  %v92_v54 = vadd.f32 %v91_v44, %v90_v35 }
  0x1a   :  { %222 = vmatpush.msra.mxu0 %v139_v7  ;;  %244 = vmatpush.msra.mxu1 %v153_v20  ;;  %v104_v55 = vrot.slane %v103_v45, 4  ;;  %v42_v56 = vadd.f32 %v41_v48, %v40_v38  ;;  %v67_v58 = vrot.slane %v66_v50, 2  ;;  %v116_v59 = vsel %vm37_vm1, %v28_v42, 0.0 }
  0x1b   :  { %v55_v57 = vadd.f32 %v54_v49, %v53_v39  ;;  %v80_v60 = vrot.slane %v79_v53, 2  ;;  %v93_v61 = vrot.slane %v92_v54, 2  ;;  %v117_v63 = vrot.slane %v116_v59, 4 }
  0x1c   :  { %223 = vmatpush.msra.mxu0 %v138_v25  ;;  %245 = vmatpush.msra.mxu1 %v152_v32  ;;  %v105_v62 = vadd.f32 %v104_v55, %v103_v45  ;;  %v43_v0 = vrot.slane %v42_v56, 1  ;;  %v68_v2 = vadd.f32 %v67_v58, %v66_v50  ;;  %v129_v3 = vsel %vm37_vm1, %v30_v52, 0.0 }
  0x1d   :  { %v56_v1 = vrot.slane %v55_v57, 1  ;;  %v81_v4 = vadd.f32 %v80_v60, %v79_v53  ;;  %v94_v5 = vadd.f32 %v93_v61, %v92_v54  ;;  %v118_v7 = vadd.f32 %v117_v63, %v116_v59 }
  0x1e   :  { %224 = vmatpush.msra.mxu0 %v137_v36  ;;  %v106_v6 = vrot.slane %v105_v62, 2  ;;  %v44_v8 = vadd.f32 %v43_v0, %v42_v56  ;;  %v69_v10 = vrot.slane %v68_v2, 1  ;;  %v130_v11 = vrot.slane %v129_v3, 4  ;;  %v273_v36 = vld [vmem:[%s492_s2] ss:$0 sm:$0xff] }
  0x1f   :  { %v57_v9 = vadd.f32 %v56_v1, %v55_v57  ;;  %v82_v12 = vrot.slane %v81_v4, 1  ;;  %v95_v13 = vrot.slane %v94_v5, 1  ;;  %v119_v15 = vrot.slane %v118_v7, 2 }
  0x20   :  { %225 = vmatpush.msra.mxu0 %v136_v46  ;;  %v107_v14 = vadd.f32 %v106_v6, %v105_v62  ;;  %v70_v16 = vadd.f32 %v69_v10, %v68_v2  ;;  %v131_v17 = vadd.f32 %v130_v11, %v129_v3 }
  0x21   :  { %226 = vmatmul.f32.vlgmr.msra.gmra.mxu0 %v199_v51  ;;  %v200_v18 = vsel %vm186_vm0, %v57_v9, %v44_v8  ;;  %v83_v19 = vadd.f32 %v82_v12, %v81_v4  ;;  %v96_v20 = vadd.f32 %v95_v13, %v94_v5  ;;  %v120_v22 = vadd.f32 %v119_v15, %v118_v7 }
  0x22   :  { %v108_v21 = vrot.slane %v107_v14, 1  ;;  %v132_v23 = vrot.slane %v131_v17, 2  ;;  %v201_v24 = vsel %vm188_vm2, %v70_v16, %v200_v18 }
  0x23   :  { %v121_v26 = vrot.slane %v120_v22, 1  ;;  %v202_v27 = vsel %vm190_vm3, %v83_v19, %v201_v24 }
  0x24   :  { %v109_v25 = vadd.f32 %v108_v21, %v107_v14  ;;  %v133_v28 = vadd.f32 %v132_v23, %v131_v17  ;;  %v203_v29 = vsel %vm192_vm4, %v96_v20, %v202_v27 }
  0x25   :  { %v122_v30 = vadd.f32 %v121_v26, %v120_v22 }
  0x26   :  { %v204_v31 = vsel %vm194_vm5, %v109_v25, %v203_v29  ;;  %v134_v32 = vrot.slane %v133_v28, 1 }
  0x27   :  { %v205_v33 = vsel %vm196_vm6, %v122_v30, %v204_v31 }
  0x28   :  { %v135_v34 = vadd.f32 %v134_v32, %v133_v28 }
  0x2a   :  { %v206_v35 = vsel %vm198_vm7, %v135_v34, %v205_v33 }
  0x2b   :  { %269 = vmatmul.msk.f32.vlgmr.msra.gmra.mxu1 %vm37_vm1, %v206_v35 }
  0x9e   :  { %v227_v37 = vpop.f32.mrf.mxu0 }
  0x9f   :  { %v228_v38 = vadd.f32 %v273_v36, %v227_v37 }
  0xa8   :  { %v247_v39 = vpop.f32.mrf.mxu1 }
  0xa9   :  { %v248_v40 = vadd.f32 %v247_v39, %v228_v38 }
  0xab   :  { %250 = vst [vmem:[#allocation2] sm:$0xff] %v248_v40 }
  0xac   :  { %254 = vsyncadd [#allocation3], 96  ;;  %s257_s25 = sshll.u32 %s493_s3, 4  ;;  %s300_s26 = smov [#allocation2]   ;;  %s258_s25 = int_to_ptr.hbm [resolvable:$true] %s257_s25 }
  0xad   :  { %s255_s27 = sshll.u32 %s300_s26, 4  ;;  %s301_s28 = smov 32   ;;  %s256_s27 = int_to_ptr.vmem [resolvable:$true] %s255_s27 }
  0xae   :  { %s302_s29 = smov 2  }
  0xaf   :  { %263 = dma.vmem_to_hbm [thread:$0]  %s256_s27, 32, %s258_s25, [#allocation3], %s301_s28, %s301_s28, %s302_s29  }
  0xb0   :  { %298 = dma.done.wait [#allocation3], 128  }
  0xb1   :  { %299 = vsyncadd [#allocation3], 4294967168 }
  0xb2   :  { %268 = vsyncpa [#allocation3], 1 }

</bundles_post_ra>
